<compile_context>
chip_gen: v6e
topology: v6e:2x2x1
jax: 0.10.0
libtpu: 0.0.40
codegen_flags: <defaults>
</compile_context>

<pallas_src>
import functools

import jax
import jax.numpy as jnp
from jax.experimental import pallas as pl
from jax.experimental.pallas import tpu as pltpu


def peda_lstm_kernel(x_ref, wih_ref, bias_ref, wlin_ref, blin_ref, out_ref, *, hidden_size):
    H = hidden_size

    # bf16 cast done in-kernel (VPU) so the wrapper does not emit a separate XLA convert.
    x = x_ref[...].astype(jnp.bfloat16)

    # Single LSTM step with h0 = c0 = 0 (seq_len == 1):
    #   gates = x @ W_ih^T + (b_ih + b_hh); the h0 @ W_hh^T term vanishes and the
    #   forget-gate columns were dropped at prep time, so the matmul emits 3H
    #   outputs (i, g, o), not 4H. bf16 operands on the MXU, f32 accumulation.
    gates = jnp.dot(x, wih_ref[...],
                    preferred_element_type=jnp.float32) + bias_ref[...]        # (B, 3H) f32

    i_g = jax.nn.sigmoid(gates[:, 0 * H:1 * H])
    g_g = jnp.tanh(gates[:, 1 * H:2 * H])
    o_g = jax.nn.sigmoid(gates[:, 2 * H:3 * H])

    c = i_g * g_g                                                              # (B, H); f*c0 == 0
    h = o_g * jnp.tanh(c)                                                      # (B, H)

    # Linear head with out_features == 1: VPU multiply + XLU lane reduction against
    # a (1, H) weight row instead of an N=1 (lane-sparse) MXU matmul. b_lin in SMEM.
    y = jnp.sum(h * wlin_ref[...], axis=-1, keepdims=True) + blin_ref[0, 0]    # (B, 1)
    out_ref[...] = y.astype(out_ref.dtype)


def prepare_params(params):
    """One-time weight prep (hoisted out of the forward path).

    Drops the forget gate entirely: with seq_len == 1 and c0 == 0 it only multiplies
    zero, so its matmul columns, bias entries and sigmoid are dead work.
    """
    H = params["hidden_size"]
    w_ih = params["w_ih"]                                    # (4H, I), PyTorch gate order i,f,g,o
    bias = params["b_ih"] + params["b_hh"]                   # (4H,)

    keep_w = jnp.concatenate(
        [w_ih[0 * H:1 * H], w_ih[2 * H:3 * H], w_ih[3 * H:4 * H]], axis=0)      # (3H, I): i,g,o
    keep_b = jnp.concatenate(
        [bias[0 * H:1 * H], bias[2 * H:3 * H], bias[3 * H:4 * H]], axis=0)      # (3H,)

    return {
        "hidden_size": H,
        # Pre-transposed, forget-gate-free input weights; bf16 MXU operand.
        "w_ih_t": keep_w.T.astype(jnp.bfloat16),                                # (I, 3H) bf16
        # Combined bias, kept f32 (added to the f32 accumulator).
        "bias": keep_b.reshape(1, 3 * H).astype(jnp.float32),                   # (1, 3H) f32
        # Head weight as a lane-dense row for the VPU mul + lane reduce.
        "w_lin_row": params["w_lin"].reshape(1, H).astype(jnp.float32),         # (1, H)  f32
        "b_lin": params["b_lin"].reshape(1, 1).astype(jnp.float32),             # (1, 1) -> SMEM
    }


def peda_lstm_forward(x, prepped):
    """x: (batch, input_size) float32. Returns (batch,) float32."""
    B, _ = x.shape
    H = prepped["hidden_size"]
    kernel = functools.partial(peda_lstm_kernel, hidden_size=H)

    # Single invocation, whole arrays resident in VMEM (tiny shapes).
    out = pl.pallas_call(
        kernel,
        out_shape=jax.ShapeDtypeStruct((B, 1), jnp.float32),
        in_specs=[
            pl.BlockSpec(memory_space=pltpu.MemorySpace.VMEM),   # x             (B, I)  f32
            pl.BlockSpec(memory_space=pltpu.MemorySpace.VMEM),   # W_ih^T[i,g,o] (I, 3H) bf16
            pl.BlockSpec(memory_space=pltpu.MemorySpace.VMEM),   # fused bias    (1, 3H) f32
            pl.BlockSpec(memory_space=pltpu.MemorySpace.VMEM),   # w_lin row     (1, H)  f32
            pl.BlockSpec(memory_space=pltpu.MemorySpace.SMEM),   # b_lin scalar  (1, 1)  f32
        ],
        out_specs=pl.BlockSpec(memory_space=pltpu.MemorySpace.VMEM),
    )(x, prepped["w_ih_t"], prepped["bias"], prepped["w_lin_row"], prepped["b_lin"])

    return out[:, 0]   # .squeeze() in the PyTorch module


def init_params(key, input_size, hidden_size):
    """Deterministic synthetic params, PyTorch-style uniform(-1/sqrt(H), 1/sqrt(H))."""
    k = 1.0 / jnp.sqrt(jnp.float32(hidden_size))
    keys = jax.random.split(key, 6)
    u = lambda kk, shape: jax.random.uniform(kk, shape, jnp.float32, -k, k)
    return {
        "hidden_size": hidden_size,
        "w_ih": u(keys[0], (4 * hidden_size, input_size)),    # nn.LSTM weight_ih_l0
        "w_hh": u(keys[1], (4 * hidden_size, hidden_size)),   # unused: h0 == 0 for seq_len == 1
        "b_ih": u(keys[2], (4 * hidden_size,)),
        "b_hh": u(keys[3], (4 * hidden_size,)),
        "w_lin": u(keys[4], (1, hidden_size)),                # nn.Linear(hidden, 1)
        "b_lin": u(keys[5], (1,)),
    }


def reference_forward_f32(x, params):
    """Pure-JAX f32 reference of the full single-step LSTM cell (h0 = c0 = 0)."""
    H = params["hidden_size"]
    B = x.shape[0]
    h0 = jnp.zeros((B, H), jnp.float32)
    c0 = jnp.zeros((B, H), jnp.float32)
    gates = x @ params["w_ih"].T + params["b_ih"] + h0 @ params["w_hh"].T + params["b_hh"]
    i_g = jax.nn.sigmoid(gates[:, 0 * H:1 * H])
    f_g = jax.nn.sigmoid(gates[:, 1 * H:2 * H])
    g_g = jnp.tanh(gates[:, 2 * H:3 * H])
    o_g = jax.nn.sigmoid(gates[:, 3 * H:4 * H])
    c = f_g * c0 + i_g * g_g
    h = o_g * jnp.tanh(c)
    return (h @ params["w_lin"].T + params["b_lin"])[:, 0]


def reference_forward_prepped(x, prepped):
    """Pure-JAX reference using the same bf16 operands / reduced math as the kernel."""
    H = prepped["hidden_size"]
    gates = jnp.dot(x.astype(jnp.bfloat16), prepped["w_ih_t"],
                    preferred_element_type=jnp.float32) + prepped["bias"]
    i_g = jax.nn.sigmoid(gates[:, 0 * H:1 * H])
    g_g = jnp.tanh(gates[:, 1 * H:2 * H])
    o_g = jax.nn.sigmoid(gates[:, 2 * H:3 * H])
    h = o_g * jnp.tanh(i_g * g_g)
    return jnp.sum(h * prepped["w_lin_row"], axis=-1) + prepped["b_lin"][0, 0]


if __name__ == "__main__":
    batch, input_size, hidden_size = 8, 16, 64   # hidden_size = 64 per the spec

    key = jax.random.PRNGKey(0)
    kx, kp = jax.random.split(key)
    x = jax.random.normal(kx, (batch, input_size), dtype=jnp.float32)
    params = init_params(kp, input_size, hidden_size)

    prepped = prepare_params(params)             # one-time weight prep (hoisted)

    y = peda_lstm_forward(x, prepped)
    y = jax.block_until_ready(y)
    assert y.shape == (batch,)

    # Exact-path check (same bf16 operands, same reduced math).
    y_ref_path = reference_forward_prepped(x, prepped)
    assert jnp.allclose(y, y_ref_path, atol=1e-4, rtol=1e-4)

    # Semantic check against the full f32 LSTM-cell math (bf16 matmul tolerance).
    y_ref_f32 = reference_forward_f32(x, params)
    assert jnp.allclose(y, y_ref_f32, atol=2e-2, rtol=2e-2)

    print("KERNEL_OK")
</pallas_src>

<mosaic_0001>
module attributes {stable_mosaic.version = 11 : i64} {
  func.func @peda_lstm_kernel(%arg0: memref<8x16xf32, #tpu.memory_space<vmem>>, %arg1: memref<16x192xbf16, #tpu.memory_space<vmem>>, %arg2: memref<1x192xf32, #tpu.memory_space<vmem>>, %arg3: memref<1x64xf32, #tpu.memory_space<vmem>>, %arg4: memref<1x1xf32, #tpu.memory_space<smem>>, %arg5: memref<8x1xf32, #tpu.memory_space<vmem>>) attributes {dimension_semantics = [], scalar_prefetch = 0 : i64, scratch_operands = 0 : i64, tpu.core_type = #tpu.core_type<tc>} {
    %c0 = arith.constant 0 : index
    %c0_0 = arith.constant 0 : index
    %0 = vector.load %arg0[%c0, %c0_0] : memref<8x16xf32, #tpu.memory_space<vmem>>, vector<8x16xf32>
    %1 = arith.truncf %0 : vector<8x16xf32> to vector<8x16xbf16>
    %c0_1 = arith.constant 0 : index
    %c0_2 = arith.constant 0 : index
    %2 = vector.load %arg1[%c0_1, %c0_2] : memref<16x192xbf16, #tpu.memory_space<vmem>>, vector<16x192xbf16>
    %cst = arith.constant dense<0.000000e+00> : vector<8x192xf32>
    %3 = tpu.matmul %1, %2, %cst {dimension_numbers = #tpu.dot_dimension_numbers<[1], [0], [0], [1], [0, 0, 1, 1], [], []>} : vector<8x16xbf16>, vector<16x192xbf16>, vector<8x192xf32> -> vector<8x192xf32>
    %c0_3 = arith.constant 0 : index
    %c0_4 = arith.constant 0 : index
    %4 = vector.load %arg2[%c0_3, %c0_4] : memref<1x192xf32, #tpu.memory_space<vmem>>, vector<1x192xf32>
    %5 = vector.broadcast %4 : vector<1x192xf32> to vector<8x192xf32>
    %6 = arith.addf %3, %5 : vector<8x192xf32>
    %7 = vector.extract_strided_slice %6 {offsets = [0, 0], sizes = [8, 64], strides = [1, 1]} : vector<8x192xf32> to vector<8x64xf32>
    %8 = arith.negf %7 : vector<8x64xf32>
    %9 = math.exp %8 : vector<8x64xf32>
    %cst_5 = arith.constant 1.000000e+00 : f32
    %10 = vector.broadcast %cst_5 : f32 to vector<8x64xf32>
    %11 = arith.addf %10, %9 : vector<8x64xf32>
    %12 = arith.divf %10, %11 : vector<8x64xf32>
    %13 = vector.extract_strided_slice %6 {offsets = [0, 64], sizes = [8, 64], strides = [1, 1]} : vector<8x192xf32> to vector<8x64xf32>
    %14 = math.tanh %13 : vector<8x64xf32>
    %15 = vector.extract_strided_slice %6 {offsets = [0, 128], sizes = [8, 64], strides = [1, 1]} : vector<8x192xf32> to vector<8x64xf32>
    %16 = arith.negf %15 : vector<8x64xf32>
    %17 = math.exp %16 : vector<8x64xf32>
    %cst_6 = arith.constant 1.000000e+00 : f32
    %18 = vector.broadcast %cst_6 : f32 to vector<8x64xf32>
    %19 = arith.addf %18, %17 : vector<8x64xf32>
    %20 = arith.divf %18, %19 : vector<8x64xf32>
    %21 = arith.mulf %12, %14 : vector<8x64xf32>
    %22 = math.tanh %21 : vector<8x64xf32>
    %23 = arith.mulf %20, %22 : vector<8x64xf32>
    %c0_7 = arith.constant 0 : index
    %c0_8 = arith.constant 0 : index
    %24 = vector.load %arg3[%c0_7, %c0_8] : memref<1x64xf32, #tpu.memory_space<vmem>>, vector<1x64xf32>
    %25 = vector.broadcast %24 : vector<1x64xf32> to vector<8x64xf32>
    %26 = arith.mulf %23, %25 : vector<8x64xf32>
    %cst_9 = arith.constant dense<0.000000e+00> : vector<8xf32>
    %27 = vector.multi_reduction <add>, %26, %cst_9 [1] : vector<8x64xf32> to vector<8xf32>
    %28 = vector.shape_cast %27 : vector<8xf32> to vector<8x1xf32>
    %c0_10 = arith.constant 0 : index
    %c0_11 = arith.constant 0 : index
    %29 = memref.load %arg4[%c0_10, %c0_11] : memref<1x1xf32, #tpu.memory_space<smem>>
    %30 = vector.broadcast %29 : f32 to vector<8x1xf32>
    %31 = arith.addf %28, %30 : vector<8x1xf32>
    %c0_12 = arith.constant 0 : index
    %c0_13 = arith.constant 0 : index
    %32 = vector.load %arg5[%c0_12, %c0_13] : memref<8x1xf32, #tpu.memory_space<vmem>>, vector<8x1xf32>
    tpu.vector_store %arg5[%c0_12, %c0_13], %31 {strides = array<i32>} : memref<8x1xf32, #tpu.memory_space<vmem>>, vector<8x1xf32>,
    return
  }
}

</mosaic_0001>

<bundles_post_ra>
// kernel: tpu_custom_call.1
= control target key start
LH: loop header
LB: loop body
LE: loop exit
PB: predicated region body
PF: predicated region fallthrough
CT: control target
= control target key end

     0   :  { %11 = vsyncpa [#allocation4], 0  ;;  %s287_s0 = inlined_call_operand.hbm [shape: f32[8,16], index: 0, kind: input, shape index: {}]   ;;  %s288_s1 = inlined_call_operand.hbm [shape: bf16[16,192], index: 1, kind: input, shape index: {}]   ;;  %s289_s2 = inlined_call_operand.vmem [shape: f32[1,192], index: 2, kind: input, shape index: {}]   ;;  %s290_s3 = inlined_call_operand.vmem [shape: f32[1,64], index: 3, kind: input, shape index: {}]   ;;  %s291_s4 = inlined_call_operand.<no memory space> [shape: f32[1,1], index: 4, kind: input, shape index: {}]   ;;  %s292_s5 = inlined_call_operand.vmem [shape: f32[8,1], index: 5, kind: output, shape index: {}]  }
   0x1   :  { %12 = vsyncpa [#allocation6], 0  ;;  %s233_s18 = smov [#allocation3]   ;;  %s234_s20 = smov [#allocation5]  }
   0x2   :  { %s19_s19 = sshll.u32 %s233_s18, 4  ;;  %s28_s21 = sshll.u32 %s234_s20, 4  ;;  %s20_s19 = int_to_ptr.vmem [resolvable:$true] %s19_s19  ;;  %s29_s21 = int_to_ptr.vmem [resolvable:$true] %s28_s21 }
   0x3   :  { %s197_s22 = scalar_lea.vmem %s20_s19, 128  ;;  %p202_p1 = scmp.lt.s32.totalorder %s20_s19, %s20_s19 }
   0x4   :  { %p198_p0 = scmp.ne.s32.totalorder %s20_s19, %s197_s22  ;;  %p203_p2 = scmp.lt.s32.totalorder %s197_s22, %s197_s22 }
   0x6   :  { %p204_p3 = por %p203_p2, %p202_p1 }
   0x8   :  { %p205_p4 = pnand %p204_p3, %p198_p0 }
   0xa   :  { %208 = shalt.err (!%p205_p4)
}
   0xb   :  { %22 = dma.hbm_to_vmem [thread:$0]  %s287_s0, 128, %s20_s19, [#allocation4]  }
   0xc   :  { %s217_s25 = scalar_lea.vmem %s29_s21, 256  ;;  %p222_p6 = scmp.lt.s32.totalorder %s29_s21, %s29_s21 }
   0xd   :  { %p218_p5 = scmp.ne.s32.totalorder %s29_s21, %s217_s25  ;;  %p223_p7 = scmp.lt.s32.totalorder %s217_s25, %s217_s25 }
   0xf   :  { %p224_p8 = por %p223_p7, %p222_p6 }
  0x11   :  { %p225_p9 = pnand %p224_p8, %p218_p5 }
  0x13   :  { %228 = shalt.err (!%p225_p9)
}
  0x14   :  { %s235_s26 = smov 128   ;;  %s236_s27 = smov 8  }
  0x15   :  { %34 = dma.hbm_to_vmem [thread:$0]  %s288_s1, 256, %s29_s21, [#allocation6], %s235_s26, %s235_s26, %s236_s27  }
  0x16   :  { %229 = dma.done.wait [#allocation4], 128  }
  0x17   :  { %230 = vsyncadd [#allocation4], 4294967168 }
  0x18   :  { %231 = dma.done.wait [#allocation6], 256  }
  0x19   :  { %232 = vsyncadd [#allocation6], 4294967040  ;;  %v237_v0 = vmov 0   ;;  %v174_v1 = vld [vmem:[#allocation5 + $0x4] ss:$8 sps:$4 sm:$0xff]   ;;  %v48_v3 = vld [vmem:[#allocation3] sm:$0xff]  ;;  %v54_v5 = vlaneseq  ;;  %v152_v34 = vstv %s291_s4 }
  0x1a   :  { %110 = vmatprep.mubr.bf16.mxu0 %v237_v0  ;;  %v176_v2 = vld [vmem:[#allocation5] ss:$8 sps:$4 sm:$0xff]   ;;  %92 = vmatprep.subr.bf16.mxu0 %v174_v1  ;;  %v49_v4 = vpack.c.bf16 %v48_v3, %v48_v3  ;;  %vm74_vm0 = vcmask 130048   ;;  %v52_v8 = vld [vmem:[%s289_s2] sm:$0x3]  ;;  %s238_s1 = smov 64  }
  0x1b   :  { %93 = vmatpush1.bf16.msra.mxu0 %v176_v2  ;;  %v55_v6 = vshrl.u32 %v54_v5, 7  ;;  %v167_v30 = vld [vmem:[%s290_s3] ss:$0 sm:$0xff]  ;;  %vm147_vm1 = vcmask 523264   ;;  %vm154_vm2 = vcmask 7168  }
  0x1d   :  { %v56_v7 = vsub.s32 0, %v55_v6  ;;  %v60_v17 = vsub.s32 1, %v55_v6 }
  0x1e   :  { %164 = vmatmul.mubr.msk.bf16.vlgmr.msra.gmra.mxu0 %vm74_vm0, %v49_v4 }
  0x1f   :  { %v57_v9 = vrot.slane %v52_v8, %v56_v7  ;;  %v61_v18 = vrot.slane %v52_v8, %v60_v17 }
  0xde   :  { %v112_v10 = vpop.f32.mrf.mxu0 }
  0xdf   :  { %v113_v11 = vadd.f32 %v112_v10, %v57_v9 }
  0xe0   :  { %v114_v12 = vpop.f32.mrf.mxu0 }
  0xe1   :  { %177 = vtanh.f32 %v113_v11  ;;  %v165_v16 = vmul.f32 -1.442695, %v113_v11  ;;  %v115_v19 = vadd.f32 %v114_v12, %v61_v18 }
  0xe2   :  { %v116_v13 = vpop.f32.mrf.mxu0 }
  0xe3   :  { %179 = vpow2.f32 %v165_v16  ;;  %v166_v20 = vmul.f32 -1.442695, %v115_v19 }
  0xe4   :  { %v117_v14 = vpop.f32.mrf.mxu0 }
  0xe5   :  { %181 = vpow2.f32 %v166_v20 }
  0xee   :  { %v178_v15 = vpop.eup %177 }
  0xef   :  { %133 = vrot.lane.b32.xlu0 %v178_v15, %s238_s1 }
  0xf0   :  { %v180_v21 = vpop.eup %179 }
  0xf1   :  { %v122_v22 = vadd.f32 1.0, %v180_v21 }
  0xf2   :  { %v182_v23 = vpop.eup %181 }
  0xf3   :  { %183 = vrcp.f32 %v122_v22  ;;  %v129_v24 = vadd.f32 1.0, %v182_v23 }
  0xf5   :  { %185 = vrcp.f32 %v129_v24 }
 0x100   :  { %v184_v25 = vpop.eup %183 }
 0x102   :  { %v186_v28 = vpop.eup %185 }
 0x161   :  { %v134_v26 = vpop.permute.xlu0 %133 }
 0x162   :  { %v136_v27 = vmul.f32 %v184_v25, %v134_v26 }
 0x164   :  { %187 = vtanh.f32 %v136_v27 }
 0x171   :  { %v188_v29 = vpop.eup %187 }
 0x172   :  { %v138_v31 = vmul.f32 %v188_v29, %v186_v28 }
 0x174   :  { %v146_v32 = vmul.f32 %v167_v30, %v138_v31 }
 0x176   :  { %v148_v33 = vsel %vm147_vm1, %v146_v32, 0.0 }
 0x177   :  { %149 = vadd.xlane.f32.xlu0 %v148_v33 }
 0x200   :  { %v150_v35 = vpop.xlane.xlu0 %149 }
 0x201   :  { %v153_v36 = vadd.f32 %v152_v34, %v150_v35 }
 0x203   :  { %155 = vst.msk [vmem:[%s292_s5] sm:$0xff] %vm154_vm2, %v153_v36 }
 0x204   :  { %160 = vsyncpa [#allocation4], 1 }
 0x205   :  { %161 = vsyncpa [#allocation6], 1 }

</bundles_post_ra>
